<compile_context>
chip_gen: v5e
topology: v5e:2x2
jax: 0.10.0
libtpu: 0.0.40
codegen_flags: <defaults>
</compile_context>

<pallas_src>
import functools

import jax
import jax.numpy as jnp
from jax.experimental import pallas as pl
from jax.experimental.pallas import tpu as pltpu


def _round_up(x, m):
    return (x + m - 1) // m * m


def _cdiv(a, b):
    return -(-a // b)


def _pick_frame_tile(T, B, target=1024, min_steps=4):
    """Frame tile: big (amortize per-step overhead), but enough grid steps."""
    tT = T if T <= target else target        # tT == T is always a legal block dim
    while B * _cdiv(T, tT) < min_steps:
        new_tT = _round_up(max(8, _cdiv(tT, 2)), 8)
        if new_tT >= tT:                     # can't shrink further (tiny T)
            break
        tT = new_tT
    return tT


def _unit2mel_cond_kernel(
    units_ref,   # (1, tT, n_unit)  units tile (f32 or bf16)
    f0vol_ref,   # (1, tT, 2)       col 0 = log1p(f0/700), col 1 = volume (f32)
    wu_t_ref,    # (n_unit, H)      unit_embed.weight.T (resident)
    wfv_ref,     # (2, H)           row 0 = f0_embed.weight, row 1 = volume_embed.weight
    cond_ref,    # (1, 1, H)        unit_b + f0_b + vol_b + spk_embed[spk_id-1] (per batch)
    out_ref,     # (1, tT, H)
):
    # unit_embed: (tT, n_unit) @ (n_unit, H) on the MXU, f32 accumulate.
    x = jnp.dot(units_ref[0], wu_t_ref[...], preferred_element_type=jnp.float32)

    fv = f0vol_ref[0]                                  # (tT, 2) f32
    # Linear(1, H) == scalar * weight_row; biases already folded into cond_ref.
    x = x + fv[:, 0:1] * wfv_ref[0:1, :]               # f0 term (log1p precomputed)
    x = x + fv[:, 1:2] * wfv_ref[1:2, :]               # volume term
    x = x + cond_ref[0]                                # (1, H) broadcast: bias + spk row

    out_ref[0] = x.astype(out_ref.dtype)


@functools.partial(jax.jit, static_argnames=("use_bf16",))
def unit2mel_forward(params, units, f0, volume, spk_id, *, use_bf16=False):
    """units: (B, T, n_unit); f0, volume: (B, T, 1); spk_id: (B, 1) int (1-indexed).

    Returns the conditioning tensor x of shape (B, T, n_hidden); dtype is
    bfloat16 when use_bf16=True (downstream decoder must accept bf16 cond).
    """
    B, T, n_unit = units.shape
    H = params["unit_w_t"].shape[1]

    # Per-batch conditioning vector: all biases + speaker embedding row.
    cond_bias = params["unit_b"] + params["f0_b"] + params["vol_b"]     # (1, H)
    spk_emb = params.get("spk_emb", None)
    if spk_emb is not None and spk_emb.shape[0] > 1:
        n_spk = spk_emb.shape[0]
        # 1-indexed speaker id -> embedding row, clamped so the gather is in-bounds.
        spk_idx = jnp.clip(spk_id[:, 0].astype(jnp.int32) - 1, 0, n_spk - 1)
        cond = cond_bias + spk_emb[spk_idx]                             # (B, H)
    else:
        cond = jnp.broadcast_to(cond_bias, (B, H))
    cond = cond[:, None, :].astype(jnp.float32)                         # (B, 1, H)

    # Tiny packed stream: [log1p(f0/700) | volume], f32. The log is fused into
    # the concatenate pass that already exists (free), so the kernel has no EUP op.
    f0vol = jnp.concatenate(
        [jnp.log1p(f0.astype(jnp.float32) * (1.0 / 700.0)),
         volume.astype(jnp.float32)], axis=-1)                          # (B, T, 2)

    # The two Linear(1, H) weight rows stacked.
    wfv = jnp.concatenate([params["f0_w"], params["vol_w"]], axis=0)    # (2, H)

    # bf16 for the dominant HBM streams (mem-bound kernel); f32 accumulate on MXU.
    in_dtype = jnp.bfloat16 if use_bf16 else jnp.float32
    out_dtype = jnp.bfloat16 if use_bf16 else jnp.float32
    units_c = units.astype(in_dtype)
    wu_t = params["unit_w_t"].astype(in_dtype)

    # Frame tiling: no padding, no output slice — Pallas clips ragged edge blocks.
    tT = _pick_frame_tile(T, B)
    n_t = pl.cdiv(T, tT)

    out = pl.pallas_call(
        _unit2mel_cond_kernel,
        out_shape=jax.ShapeDtypeStruct((B, T, H), out_dtype),
        grid=(B, n_t),                                       # b outer, frame-tile inner
        in_specs=[
            pl.BlockSpec((1, tT, n_unit), lambda b, t: (b, t, 0)),   # units
            pl.BlockSpec((1, tT, 2),      lambda b, t: (b, t, 0)),   # log1p(f0/700) | vol
            pl.BlockSpec((n_unit, H),     lambda b, t: (0, 0)),      # unit W^T (resident)
            pl.BlockSpec((2, H),          lambda b, t: (0, 0)),      # f0/vol W (resident)
            pl.BlockSpec((1, 1, H),       lambda b, t: (b, 0, 0)),   # bias + spk row
        ],
        out_specs=pl.BlockSpec((1, tT, H), lambda b, t: (b, t, 0)),
        compiler_params=pltpu.CompilerParams(
            dimension_semantics=("parallel", "parallel"),
            vmem_limit_bytes=32 * 1024 * 1024,
        ),
    )(units_c, f0vol, wu_t, wfv, cond)

    return out


def _reference(params, units, f0, volume, spk_id):
    x = jnp.einsum("btu,uh->bth", units, params["unit_w_t"]) + params["unit_b"]
    x = x + jnp.log(1.0 + f0 / 700.0) * params["f0_w"] + params["f0_b"]
    x = x + volume * params["vol_w"] + params["vol_b"]
    n_spk = params["spk_emb"].shape[0]
    idx = jnp.clip(spk_id[:, 0] - 1, 0, n_spk - 1)
    x = x + params["spk_emb"][idx][:, None, :]
    return x


def make_params(key, n_unit, n_hidden, n_spk):
    ks = jax.random.split(key, 7)
    s = 0.02
    return {
        # unit_embed: nn.Linear(n_unit, H) — stored pre-transposed (n_unit, H)
        "unit_w_t": s * jax.random.normal(ks[0], (n_unit, n_hidden), jnp.float32),
        "unit_b":   s * jax.random.normal(ks[1], (1, n_hidden), jnp.float32),
        # f0_embed: nn.Linear(1, H) — weight column as (1, H)
        "f0_w":     s * jax.random.normal(ks[2], (1, n_hidden), jnp.float32),
        "f0_b":     s * jax.random.normal(ks[3], (1, n_hidden), jnp.float32),
        # volume_embed: nn.Linear(1, H)
        "vol_w":    s * jax.random.normal(ks[4], (1, n_hidden), jnp.float32),
        "vol_b":    s * jax.random.normal(ks[5], (1, n_hidden), jnp.float32),
        # spk_embed: nn.Embedding(n_spk, H)
        "spk_emb":  s * jax.random.normal(ks[6], (n_spk, n_hidden), jnp.float32),
        # aug_shift_embed: None (use_pitch_aug=False, module default)
    }


if __name__ == "__main__":
    B, T, n_unit, n_hidden, n_spk = 2, 16, 32, 256, 4

    key = jax.random.PRNGKey(0)
    k_p, k_u, k_f, k_v = jax.random.split(key, 4)

    params = make_params(k_p, n_unit, n_hidden, n_spk)

    units = jax.random.normal(k_u, (B, T, n_unit), jnp.float32)
    f0 = 220.0 + 50.0 * jax.random.uniform(k_f, (B, T, 1), jnp.float32)
    volume = jax.random.uniform(k_v, (B, T, 1), jnp.float32)
    spk_id = jnp.array([[1], [3]], dtype=jnp.int32)   # 1-indexed, as in PyTorch

    ref = _reference(params, units, f0, volume, spk_id)

    # f32 path — strict correctness check.
    out = unit2mel_forward(params, units, f0, volume, spk_id, use_bf16=False)
    out = jax.block_until_ready(out)
    assert out.shape == (B, T, n_hidden)
    assert out.dtype == jnp.float32
    assert jnp.allclose(out, ref, atol=1e-5, rtol=1e-5)

    # Non-multiple-of-8 frame count — exercises the ragged edge-block path
    # (no wrapper padding, no output slice).
    T2 = 13
    out2 = unit2mel_forward(
        params, units[:, :T2], f0[:, :T2], volume[:, :T2], spk_id, use_bf16=False)
    out2 = jax.block_until_ready(out2)
    assert out2.shape == (B, T2, n_hidden)
    assert jnp.allclose(out2, ref[:, :T2], atol=1e-5, rtol=1e-5)
    assert jnp.all(jnp.isfinite(out2))

    # bf16 input/weight/output streams (bandwidth fast path) — loose tolerance.
    out_bf = unit2mel_forward(params, units, f0, volume, spk_id, use_bf16=True)
    out_bf = jax.block_until_ready(out_bf)
    assert out_bf.shape == (B, T, n_hidden)
    assert out_bf.dtype == jnp.bfloat16
    assert jnp.allclose(out_bf.astype(jnp.float32), ref, atol=2e-2, rtol=2e-2)

    print("KERNEL_OK")
</pallas_src>

<mosaic_0001>
module attributes {stable_mosaic.version = 11 : i64} {
  func.func @_unit2mel_cond_kernel(%arg0: i32, %arg1: i32, %arg2: memref<1x8x32xf32, #tpu.memory_space<vmem>>, %arg3: memref<1x8x2xf32, #tpu.memory_space<vmem>>, %arg4: memref<32x256xf32, #tpu.memory_space<vmem>>, %arg5: memref<2x256xf32, #tpu.memory_space<vmem>>, %arg6: memref<1x1x256xf32, #tpu.memory_space<vmem>>, %arg7: memref<1x8x256xf32, #tpu.memory_space<vmem>>) attributes {dimension_semantics = [#tpu.dimension_semantics<parallel>, #tpu.dimension_semantics<parallel>], iteration_bounds = array<i64: 2, 2>, scalar_prefetch = 0 : i64, scratch_operands = 0 : i64, tpu.core_type = #tpu.core_type<tc>, window_params = [{transform_indices = @transform_0, window_bounds = array<i64: 1, 8, 32>}, {transform_indices = @transform_1, window_bounds = array<i64: 1, 8, 2>}, {pipeline_mode = #tpu.pipeline_mode<synchronous>, transform_indices = @transform_2, window_bounds = array<i64: 32, 256>}, {pipeline_mode = #tpu.pipeline_mode<synchronous>, transform_indices = @transform_3, window_bounds = array<i64: 2, 256>}, {transform_indices = @transform_4, window_bounds = array<i64: 1, 1, 256>}, {transform_indices = @transform_5, window_bounds = array<i64: 1, 8, 256>}]} {
    %c0 = arith.constant 0 : index
    %c0_0 = arith.constant 0 : index
    %c0_1 = arith.constant 0 : index
    %0 = vector.load %arg2[%c0, %c0_0, %c0_1] : memref<1x8x32xf32, #tpu.memory_space<vmem>>, vector<1x8x32xf32>
    %1 = vector.shape_cast %0 : vector<1x8x32xf32> to vector<8x32xf32>
    %c0_2 = arith.constant 0 : index
    %c0_3 = arith.constant 0 : index
    %2 = vector.load %arg4[%c0_2, %c0_3] : memref<32x256xf32, #tpu.memory_space<vmem>>, vector<32x256xf32>
    %cst = arith.constant dense<0.000000e+00> : vector<8x256xf32>
    %3 = tpu.matmul %1, %2, %cst {dimension_numbers = #tpu.dot_dimension_numbers<[1], [0], [0], [1], [0, 0, 1, 1], [], []>} : vector<8x32xf32>, vector<32x256xf32>, vector<8x256xf32> -> vector<8x256xf32>
    %c0_4 = arith.constant 0 : index
    %c0_5 = arith.constant 0 : index
    %c0_6 = arith.constant 0 : index
    %4 = vector.load %arg3[%c0_4, %c0_5, %c0_6] : memref<1x8x2xf32, #tpu.memory_space<vmem>>, vector<1x8x2xf32>
    %5 = vector.shape_cast %4 : vector<1x8x2xf32> to vector<8x2xf32>
    %6 = vector.extract_strided_slice %5 {offsets = [0, 0], sizes = [8, 1], strides = [1, 1]} : vector<8x2xf32> to vector<8x1xf32>
    %c0_7 = arith.constant 0 : index
    %c0_8 = arith.constant 0 : index
    %7 = vector.load %arg5[%c0_7, %c0_8] : memref<2x256xf32, #tpu.memory_space<vmem>>, vector<1x256xf32>
    %8 = vector.broadcast %6 : vector<8x1xf32> to vector<8x256xf32>
    %9 = vector.broadcast %7 : vector<1x256xf32> to vector<8x256xf32>
    %10 = arith.mulf %8, %9 : vector<8x256xf32>
    %11 = arith.addf %3, %10 : vector<8x256xf32>
    %12 = vector.extract_strided_slice %5 {offsets = [0, 1], sizes = [8, 1], strides = [1, 1]} : vector<8x2xf32> to vector<8x1xf32>
    %c1 = arith.constant 1 : index
    %c0_9 = arith.constant 0 : index
    %13 = vector.load %arg5[%c1, %c0_9] : memref<2x256xf32, #tpu.memory_space<vmem>>, vector<1x256xf32>
    %14 = vector.broadcast %12 : vector<8x1xf32> to vector<8x256xf32>
    %15 = vector.broadcast %13 : vector<1x256xf32> to vector<8x256xf32>
    %16 = arith.mulf %14, %15 : vector<8x256xf32>
    %17 = arith.addf %11, %16 : vector<8x256xf32>
    %c0_10 = arith.constant 0 : index
    %c0_11 = arith.constant 0 : index
    %c0_12 = arith.constant 0 : index
    %18 = vector.load %arg6[%c0_10, %c0_11, %c0_12] : memref<1x1x256xf32, #tpu.memory_space<vmem>>, vector<1x1x256xf32>
    %19 = vector.shape_cast %18 : vector<1x1x256xf32> to vector<1x256xf32>
    %20 = vector.broadcast %19 : vector<1x256xf32> to vector<8x256xf32>
    %21 = arith.addf %17, %20 : vector<8x256xf32>
    %c0_13 = arith.constant 0 : index
    %c0_14 = arith.constant 0 : index
    %c0_15 = arith.constant 0 : index
    %22 = vector.load %arg7[%c0_13, %c0_14, %c0_15] : memref<1x8x256xf32, #tpu.memory_space<vmem>>, vector<1x8x256xf32>
    %23 = vector.shape_cast %22 : vector<1x8x256xf32> to vector<8x256xf32>
    %24 = vector.shape_cast %21 : vector<8x256xf32> to vector<1x8x256xf32>
    tpu.vector_store %arg7[%c0_13, %c0_14, %c0_15], %24 {strides = array<i32>} : memref<1x8x256xf32, #tpu.memory_space<vmem>>, vector<1x8x256xf32>,
    return
  }
  func.func @transform_0(%arg0: i32, %arg1: i32) -> (i32, i32, i32) {
    %c0_i32 = arith.constant 0 : i32
    %c0_i32_0 = arith.constant 0 : i32
    return %arg0, %arg1, %c0_i32 : i32, i32, i32
  }
  func.func @transform_1(%arg0: i32, %arg1: i32) -> (i32, i32, i32) {
    %c0_i32 = arith.constant 0 : i32
    %c0_i32_0 = arith.constant 0 : i32
    return %arg0, %arg1, %c0_i32 : i32, i32, i32
  }
  func.func @transform_2(%arg0: i32, %arg1: i32) -> (i32, i32) {
    %c0_i32 = arith.constant 0 : i32
    %c0_i32_0 = arith.constant 0 : i32
    %c0_i32_1 = arith.constant 0 : i32
    return %c0_i32, %c0_i32_0 : i32, i32
  }
  func.func @transform_3(%arg0: i32, %arg1: i32) -> (i32, i32) {
    %c0_i32 = arith.constant 0 : i32
    %c0_i32_0 = arith.constant 0 : i32
    %c0_i32_1 = arith.constant 0 : i32
    return %c0_i32, %c0_i32_0 : i32, i32
  }
  func.func @transform_4(%arg0: i32, %arg1: i32) -> (i32, i32, i32) {
    %c0_i32 = arith.constant 0 : i32
    %c0_i32_0 = arith.constant 0 : i32
    %c0_i32_1 = arith.constant 0 : i32
    return %arg0, %c0_i32, %c0_i32_0 : i32, i32, i32
  }
  func.func @transform_5(%arg0: i32, %arg1: i32) -> (i32, i32, i32) {
    %c0_i32 = arith.constant 0 : i32
    %c0_i32_0 = arith.constant 0 : i32
    return %arg0, %arg1, %c0_i32 : i32, i32, i32
  }
}

</mosaic_0001>

<bundles_post_ra>
// kernel: unit2mel_forward.1
= control target key start
LH: loop header
LB: loop body
LE: loop exit
PB: predicated region body
PF: predicated region fallthrough
CT: control target
= control target key end

     0   :  { %10 = vsyncpa [#allocation3], 0  ;;  %s904_s0 = inlined_call_operand.vmem [shape: f32[2,16,32], index: 0, kind: input, shape index: {}]   ;;  %s905_s1 = inlined_call_operand.vmem [shape: f32[2,16,2], index: 1, kind: input, shape index: {}]   ;;  %s906_s2 = inlined_call_operand.vmem [shape: f32[32,256], index: 2, kind: input, shape index: {}]   ;;  %s907_s3 = inlined_call_operand.vmem [shape: f32[2,256], index: 3, kind: input, shape index: {}]   ;;  %s908_s4 = inlined_call_operand.vmem [shape: f32[2,1,256], index: 4, kind: input, shape index: {}]   ;;  %s909_s5 = inlined_call_operand.hbm [shape: f32[2,16,256], index: 5, kind: output, shape index: {}]  }
   0x1   :  { %12 = vsyncpa [#allocation3 + $0x1], 0  ;;  %s739_s18 = smov 0   ;;  %s741_s19 = smov 0  }
   0x2   :  { %s743_s20 = smov 0   ;;  %s745_s21 = smov 0  }
   0x3   :  { %s747_s22 = smov 0   ;;  %s749_s23 = smov 0  }
   0x4   :  { %s751_s24 = smov 0   ;;  %s753_s25 = smov 0  }
   0x5 LB: > { %s516_s26 = sadd.s32 4294967295, %s705_s25   ;;  %s517_s27 = sadd.s32 4294967294, %s705_s25   ;;  %s705_s25 = sphi %s753_s25, %s18_s25   ;;  %s701_s24 = sphi %s751_s24, %s918_s24   ;;  %s697_s23 = sphi %s749_s23, %s917_s23   ;;  %s693_s22 = sphi %s747_s22, %s916_s22   ;;  %s689_s21 = sphi %s745_s21, %s915_s21   ;;  %s685_s20 = sphi %s743_s20, %s914_s20   ;;  %s681_s19 = sphi %s741_s19, %s913_s19   ;;  %s677_s18 = sphi %s739_s18, %s912_s18  }
   0x6   : > { %s27_s28 = sadd.s32 1, %s697_s23  ;;  %s30_s29 = sadd.s32 1, %s701_s24 }
   0x7   : > { %p28_p0 = scmp.ge.s32.totalorder %s27_s28, 2  ;;  %p173_p1 = scmp.ne.s32.totalorder %s685_s20, %s681_s19 }
   0x8   : > { %p174_p2 = scmp.eq.s32.totalorder %s516_s26, 3  ;;  %p179_p5 = scmp.ne.s32.totalorder %s681_s19, %s677_s18 }
   0x9   : > { %s920_s28 = smov (%p28_p0, %s27_s28), 0  ;;  %s922_s29 = smov (!%p28_p0, %s30_s29), %s701_s24 }
   0xa   : > { %s159_s30 = ssub.s32 %s697_s23, %s920_s28  ;;  %p790_p3 = por %p174_p2, %p173_p1 }
   0xb   : > { %p32_p4 = scmp.ge.s32.totalorder %s922_s29, 2  ;;  %p180_p6 = scmp.eq.s32.totalorder %s517_s27, 3 }
   0xc   : > { %p520_p7 = scmp.ge.s32.totalorder %s705_s25, 1  ;;  %p233_p9 = scmp.lt.s32.totalorder %s705_s25, 5 }
   0xd   : > { %s924_s29 = smov (%p32_p4, %s922_s29), 0  ;;  %p799_p8 = por %p180_p6, %p179_p5 }
   0xe   : > { %s158_s8 = ssub.s32 %s701_s24, %s924_s29  ;;  %s163_s9 = sadd.s32 1, %s685_s20 }
   0xf   : > { %s160_s10 = sor.u32 %s159_s30, %s158_s8  ;;  %p234_p10 = pnand %p520_p7, %p233_p9 }
  0x10   : > { %p161_p11 = scmp.eq.s32.totalorder %s160_s10, 0  ;;  %p276_p12 = scmp.lt.s32.totalorder (!%p234_p10), %s693_s22, 1 }
  0x11   : > { %237 = sbr.rel (%p234_p10) target bundleno = 166 (0xa6), region = 40  ;;  %p278_p13 = scmp.lt.s32.totalorder (!%p234_p10), %s689_s21, 1 }
  0x12   : > { %s808_s11 = scalar_select %p161_p11, %s685_s20, %s163_s9  }
  0x16   : > { %v303_v0 = vld [vmem:[%s906_s2 + $0x30] sm:$0xff]  ;;  %v304_v1 = vld [vmem:[%s906_s2 + $0x38] sm:$0xff]  ;;  %v301_v2 = vld [vmem:[%s906_s2 + $0x20] sm:$0xff]  ;;  %s831_s12 = scalar_select %p276_p12, %s693_s22, 1  ;;  %v707_v6 = vmov 0   ;;  %vm319_vm0 = vcmask 261120  }
  0x17   : > { %335 = vmatpush.msra.mxu0 %v303_v0  ;;  %355 = vmatpush.msra.mxu1 %v304_v1  ;;  %v302_v3 = vld [vmem:[%s906_s2 + $0x28] sm:$0xff]  ;;  %v299_v4 = vld [vmem:[%s906_s2 + $0x10] sm:$0xff]  ;;  %v300_v5 = vld [vmem:[%s906_s2 + $0x18] sm:$0xff]  ;;  %s279_s13 = scalar_select %p278_p13, %s689_s21, 1  ;;  %v708_v11 = vmov 1  }
  0x18   : > { %609 = vset.pattern.permute.xlu0 %v707_v6  ;;  %v297_v7 = vld [vmem:[%s906_s2] sm:$0xff]  ;;  %v298_v8 = vld [vmem:[%s906_s2 + $0x8] sm:$0xff]  ;;  %s522_s26 = sshll.u32 %s831_s12, 1  ;;  %s531_s12 = sshll.u32 %s689_s21, 1 }
  0x19   : > { %336 = vmatpush.msra.mxu0 %v301_v2  ;;  %356 = vmatpush.msra.mxu1 %v302_v3  ;;  %s281_s27 = sadd.s32 %s522_s26, %s279_s13  ;;  %s532_s13 = sshll.u32 %s693_s22, 2  ;;  %v306_v13 = vld [vmem:[%s907_s3] ss:$2 sm:$0x3] }
  0x1a   : > { %s523_s30 = sshll.u32 %s281_s27, 3  ;;  %v529_v14 = vld [vmem:[%s907_s3 + $0x1] ss:$2 sm:$0x3]  ;;  %v313_v15 = vperm.slane %v306_v13, 0  ;;  %v314_v16 = vperm.slane %v306_v13, 1 }
  0x1b   : > { %337 = vmatpush.msra.mxu0 %v299_v4  ;;  %357 = vmatpush.msra.mxu1 %v300_v5  ;;  %s283_s10 = scalar_lea.vmem %s904_s0, %s523_s30  ;;  %s291_s16 = scalar_lea.vmem %s905_s1, %s523_s30  ;;  %v370_v17 = vperm.slane %v529_v14, 0  ;;  %v371_v18 = vperm.slane %v529_v14, 1 }
  0x1c   : > { %v296_v9 = vld [vmem:[%s283_s10] sm:$0xff]  ;;  %s273_s30 = sand.u32 1, %s681_s19   ;;  %s400_s10 = sadd.s32 %s532_s13, %s531_s12 }
  0x1d   : > { %338 = vmatpush.msra.mxu0 %v297_v7  ;;  %358 = vmatpush.msra.mxu1 %v298_v8  ;;  %v305_v10 = vld [vmem:[%s291_s16] sm:$0xff]  ;;  %s295_s16 = scalar_lea.vmem %s908_s4, %s522_s26  ;;  %s521_s21 = sshll.u32 %s273_s30, 4 }
  0x1e   : > { %527 = vmatmul.msk.f32.vlgmr.msra.gmra.mxu0 %vm319_vm0, %v296_v9  ;;  %528 = vmatmul.msk.f32.vlgmr.msra.gmra.mxu1 %vm319_vm0, %v296_v9  ;;  %s533_s22 = sshll.u32 %s400_s10, 3  ;;  %v378_v19 = vld [vmem:[%s295_s16] sm:$0x3]  ;;  %s275_s26 = scalar_lea.vmem [#allocation2], %s521_s21 }
  0x1f   : > { %309 = vperm.xlu0 %609, %v305_v10   ;;  %s402_s17 = scalar_lea.hbm %s909_s5, %s533_s22  ;;  %v380_v28 = vperm.slane %v378_v19, 0  ;;  %v381_v30 = vperm.slane %v378_v19, 1  ;;  %s404_s27 = sshll.u32 %s275_s26, 4  ;;  %s405_s27 = int_to_ptr.vmem [resolvable:$true] %s404_s27 }
  0x20   : > { %s406_s8 = sshll.u32 %s402_s17, 4  ;;  %s389_s9 = scalar_lea.sflag [#allocation3], %s273_s30  ;;  %s407_s8 = int_to_ptr.hbm [resolvable:$true] %s406_s8 }
  0x21   : > { %s625_s10 = sshra.s32 %s407_s8, 4  ;;  %s631_s21 = scalar_lea.hbm %s909_s5, 64  ;;  %s626_s10 = int_to_ptr.hbm [resolvable:$true] %s625_s10 }
  0x22   : > { %s627_s14 = scalar_lea.hbm %s626_s10, 16  ;;  %p632_p4 = scmp.lt.s32.totalorder %s626_s10, %s909_s5 }
  0x23   : > { %p628_p0 = scmp.ne.s32.totalorder %s626_s10, %s627_s14  ;;  %p633_p5 = scmp.lt.s32.totalorder %s631_s21, %s627_s14 }
  0x25   : > { %p629_p1 = pnand %p628_p0, %p790_p3  ;;  %p634_p6 = por %p633_p5, %p632_p4 }
  0x27   : > { %610 = vset.pattern.permute.xlu0 %v708_v11  ;;  %p630_p2 = pneg %p629_p1 }
  0x28   : > { %366 = vperm.xlu0 %610, %v305_v10  }
  0x29   : > { %p635_p7 = pnand %p634_p6, %p630_p2 }
  0x91   : > { %v310_v12 = vpop.permute.xlu0 %309 }
  0x92   : > { %v317_v20 = vmul.f32 %v313_v15, %v310_v12  ;;  %v318_v21 = vmul.f32 %v314_v16, %v310_v12 }
  0x9a   : > { %v367_v22 = vpop.permute.xlu0 %366 }
  0x9b   : > { %v374_v23 = vmul.f32 %v370_v17, %v367_v22  ;;  %v375_v24 = vmul.f32 %v371_v18, %v367_v22  ;;  %v340_v25 = vpop.f32.mrf.mxu0  ;;  %v360_v26 = vpop.f32.mrf.mxu1 }
  0x9c   : > { %v341_v27 = vadd.f32 %v340_v25, %v317_v20  ;;  %v361_v29 = vadd.f32 %v360_v26, %v318_v21 }
  0x9e   : > { %v376_v31 = vadd.f32 %v374_v23, %v341_v27  ;;  %v377_v32 = vadd.f32 %v375_v24, %v361_v29 }
  0xa0   : > { %v384_v33 = vadd.f32 %v380_v28, %v376_v31  ;;  %v385_v34 = vadd.f32 %v381_v30, %v377_v32 }
  0xa2   : > { %386 = vst [vmem:[%s275_s26] sm:$0xff] %v384_v33 }
  0xa3   : > { %387 = vst [vmem:[%s275_s26 + $0x8] sm:$0xff] %v385_v34 }
  0xa4   : > { %638 = shalt.err (!%p635_p7)
}
  0xa5   : > { %536 = dma.vmem_to_hbm [thread:$0]  (%p790_p3), %s405_s27, 256, %s407_s8, %s389_s9  }
  0xa6 PF: > { %p542_p9 = scmp.ge.s32.totalorder %s705_s25, 2  ;;  %s418_s30 = sand.u32 1, %s677_s18  }
  0xa7   : > { %s419_s13 = scalar_lea.sflag [#allocation3], %s418_s30 }
  0xa8   : > { %p539_p10 = pnand %p542_p9, %p799_p8 }
  0xaa   : > { %p540_p11 = pneg %p539_p10 }
  0xac   : > { %672 = dma.done.wait (%p540_p11), %s419_s13, 256  }
  0xad   : > { %674 = vsyncadd (%p540_p11), %s419_s13, 4294967040  ;;  %s18_s25 = sadd.s32 1, %s705_s25   ;;  %s912_s18 = smov %s681_s19 }
  0xae   : > { %p15_p12 = scmp.ge.s32.totalorder %s18_s25, 6   ;;  %s913_s19 = smov %s685_s20 }
  0xaf   : > { %s914_s20 = smov %s808_s11  ;;  %s915_s21 = smov %s697_s23 }
  0xb0   : > { %s916_s22 = smov %s701_s24  ;;  %s917_s23 = smov %s920_s28 }
  0xb1   : > { %s918_s24 = smov %s924_s29  ;;  %17 = sbr.rel (!%p15_p12) target bundleno = 5 (0x5), region = 82 }
  0xb6   :  { %425 = vsyncpa [#allocation3], 1 }
  0xb7   :  { %427 = vsyncpa [#allocation3 + $0x1], 1 }

</bundles_post_ra>
